<compile_context>
chip_gen: v6e
topology: v6e:2x2x1
jax: 0.10.0
libtpu: 0.0.40
codegen_flags: <defaults>
</compile_context>

<pallas_src>
import functools

import jax
import jax.numpy as jnp
from jax.experimental import pallas as pl
from jax.experimental.pallas import tpu as pltpu


def _round_up(v, m):
    return ((v + m - 1) // m) * m


def _vmem_limit_bytes():
    """Per-generation VMEM budget (~48 MiB v7x, ~96 MiB v5e/v6e)."""
    cap = 64 << 20  # conservative (v7x-sized) default if the query fails
    try:
        info = pltpu.get_tpu_info()
        for name in ("vmem_capacity_bytes", "vmem_size_bytes", "vmem_bytes"):
            v = getattr(info, name, None)
            if v:
                cap = int(v)
                break
    except Exception:
        pass
    return min(cap * 3 // 4, 100 << 20)


def _pick_row_tile(n, per_row_bytes, budget_bytes, cap):
    """Largest 8/16-aligned row tile that fits `budget_bytes`, keeping >=2
    grid tiles on the parallel axis (both v7x TCs) when the batch allows."""
    align = 16 if n >= 32 else 8
    rt = (budget_bytes // max(per_row_bytes, 1)) // align * align
    rt = max(align, min(rt, cap))
    if n >= 2 * align:
        rt = min(rt, _round_up(pl.cdiv(n, 2), align))
    return max(8, min(rt, _round_up(n, align)))


# ----------------------------- kernels --------------------------------------

def _linear_relu_kernel(x_ref, w_ref, b_ref, o_ref, acc_ref, *, k_total):
    """freeze_bn path: y = relu(x @ W' + b') with BN folded into W'/b'."""
    k = pl.program_id(1)
    tk = x_ref.shape[1]

    @pl.when(k == 0)
    def _init():
        acc_ref[...] = jnp.zeros_like(acc_ref)

    x = x_ref[...]
    if k_total % tk != 0:  # mask ragged columns of the last K tile (static)
        col = jax.lax.broadcasted_iota(jnp.int32, x.shape, 1) + k * tk
        x = jnp.where(col < k_total, x, 0.0)
    acc_ref[...] += jnp.dot(x.astype(jnp.bfloat16), w_ref[...],
                            preferred_element_type=jnp.float32)

    @pl.when(k == pl.num_programs(1) - 1)
    def _finish():
        o_ref[...] = jnp.maximum(acc_ref[...] + b_ref[...], 0.0).astype(o_ref.dtype)


def _linear_stats_kernel(x_ref, w_ref, b_ref, h_ref, sum_ref, m2_ref, acc_ref,
                         *, n_rows, k_total):
    """training path: h = x @ W^T + b, plus per-row-tile batch-stat partials
    (valid-row count handled via masking; M2 is mean-shifted per tile)."""
    i = pl.program_id(0)
    k = pl.program_id(1)
    rt = acc_ref.shape[0]
    tk = x_ref.shape[1]

    @pl.when(k == 0)
    def _init():
        acc_ref[...] = jnp.zeros_like(acc_ref)

    x = x_ref[...]
    if k_total % tk != 0:  # mask ragged columns of the last K tile (static)
        col = jax.lax.broadcasted_iota(jnp.int32, x.shape, 1) + k * tk
        x = jnp.where(col < k_total, x, 0.0)
    acc_ref[...] += jnp.dot(x.astype(jnp.bfloat16), w_ref[...],
                            preferred_element_type=jnp.float32)

    @pl.when(k == pl.num_programs(1) - 1)
    def _finish():
        h = acc_ref[...] + b_ref[...]
        h_ref[...] = h
        row = jax.lax.broadcasted_iota(jnp.int32, (rt, 1), 0) + i * rt
        valid = row < n_rows                                    # ragged rows
        cnt = jnp.minimum(rt, n_rows - i * rt).astype(jnp.float32)
        hm = jnp.where(valid, h, 0.0)
        s = jnp.sum(hm, axis=0, keepdims=True)                  # (1, p_pad)
        mu = s / cnt
        c = jnp.where(valid, h - mu, 0.0)
        sum_ref[...] = s.reshape(sum_ref.shape)
        m2_ref[...] = jnp.sum(c * c, axis=0, keepdims=True).reshape(m2_ref.shape)


def _affine_relu_kernel(h_ref, scale_ref, shift_ref, o_ref):
    """training path, pass 2: relu(h * scale + shift) (BN folded in XLA)."""
    y = h_ref[...] * scale_ref[...] + shift_ref[...]
    o_ref[...] = jnp.maximum(y, 0.0).astype(o_ref.dtype)


# --------------------------- pallas_call wrappers ----------------------------

def _matmul_call(kernel_fn, x, p, rt, nt, out_shapes, out_specs):
    p_pad, tk, nk = p["p_pad"], p["tk"], p["nk"]

    def build(single_buffer):
        # Single-buffer resident operands (constant index_map) to save VMEM;
        # W only when it is truly resident (nk == 1).
        w_mode = ({"pipeline_mode": pl.Buffered(1)}
                  if (single_buffer and nk == 1) else {})
        b_mode = {"pipeline_mode": pl.Buffered(1)} if single_buffer else {}
        return pl.pallas_call(
            kernel_fn,
            out_shape=out_shapes,
            grid=(nt, nk),
            in_specs=[
                pl.BlockSpec((rt, tk), lambda i, k: (i, k)),            # x tile
                pl.BlockSpec((tk, p_pad), lambda i, k: (k, 0), **w_mode),
                pl.BlockSpec((1, p_pad), lambda i, k: (0, 0), **b_mode),
            ],
            out_specs=out_specs,
            scratch_shapes=[pltpu.VMEM((rt, p_pad), jnp.float32)],
            compiler_params=pltpu.CompilerParams(
                dimension_semantics=("parallel", "arbitrary"),
                vmem_limit_bytes=p["vmem"]),
        )(x, p["w_p"], p["b_p"])

    try:
        return build(True)
    except Exception:
        # pipeline_mode / Buffered(1) unsupported on this build -> default bufs
        return build(False)


# ------------------------------ module API -----------------------------------

def prepare_params(w, b, gamma, beta, running_mean, running_var, *,
                   freeze_bn, eps=1e-5, tk=None):
    """One-time weight prep (hoisted out of the per-call path): BN fold for
    freeze_bn, transpose, channel/K zero-pad, bf16 cast, tile-size choice."""
    planes, k_total = w.shape
    p_pad = _round_up(planes, 256) if planes > 128 else _round_up(planes, 128)
    vmem = _vmem_limit_bytes()
    budget = int(vmem * 0.7)

    if tk is None:
        w_budget = budget // 3
        if k_total * p_pad * 2 <= w_budget:
            tk = k_total                      # whole K resident, single k step
        else:
            tk = max(128, (w_budget // (p_pad * 2)) // 128 * 128)
    if tk < k_total:
        tk = max(128, (tk // 128) * 128)      # lane-aligned K tiles
    else:
        tk = k_total
    k_pad = _round_up(k_total, tk)
    nk = k_pad // tk

    if freeze_bn:
        # bn.eval(): fold running stats into the linear layer.
        s = gamma * jax.lax.rsqrt(running_var + eps)
        w_eff = w * s[:, None]
        b_eff = (b - running_mean) * s + beta
    else:
        w_eff, b_eff = w, b

    w_p = (jnp.zeros((k_pad, p_pad), jnp.float32)
           .at[:k_total, :planes].set(w_eff.T).astype(jnp.bfloat16))

    def pad_vec(v):
        return jnp.zeros((1, p_pad), jnp.float32).at[0, :planes].set(v)

    params = dict(freeze_bn=freeze_bn, eps=eps, planes=planes,
                  k_total=k_total, p_pad=p_pad, tk=tk, nk=nk, vmem=vmem,
                  budget=budget, w_p=w_p, b_p=pad_vec(b_eff))
    if not freeze_bn:
        params["gamma_p"] = pad_vec(gamma)
        params["beta_p"] = pad_vec(beta)
    return params


def histgram_std_forward(x, params):
    """Forward of HistgramStdBasicBlock (fc -> BN -> ReLU) with prepared params."""
    n, k_total = x.shape
    assert k_total == params["k_total"]
    planes, p_pad = params["planes"], params["p_pad"]
    tk = params["tk"]
    budget, vmem, eps = params["budget"], params["vmem"], params["eps"]

    # Matmul row tile: account for (worst-case double-buffered) resident W and
    # double-buffered x / h tiles plus the f32 accumulator.
    w_bytes = 2 * tk * p_pad * 2
    per_row = tk * 4 * 2 + p_pad * 4 * 2 + p_pad * 4
    rt = _pick_row_tile(n, per_row, max(budget - w_bytes, budget // 8), cap=512)
    nt = pl.cdiv(n, rt)

    if params["freeze_bn"]:
        kern = functools.partial(_linear_relu_kernel, k_total=k_total)
        out = _matmul_call(
            kern, x, params, rt, nt,
            out_shapes=jax.ShapeDtypeStruct((n, p_pad), jnp.float32),
            out_specs=pl.BlockSpec((rt, p_pad), lambda i, k: (i, 0)))
        return out[:, :planes]

    # Training-mode BN: fused matmul + per-tile batch-stat partials.
    kern = functools.partial(_linear_stats_kernel, n_rows=n, k_total=k_total)
    h, tile_sum, tile_m2 = _matmul_call(
        kern, x, params, rt, nt,
        out_shapes=(jax.ShapeDtypeStruct((n, p_pad), jnp.float32),
                    jax.ShapeDtypeStruct((nt, 1, p_pad), jnp.float32),
                    jax.ShapeDtypeStruct((nt, 1, p_pad), jnp.float32)),
        out_specs=(pl.BlockSpec((rt, p_pad), lambda i, k: (i, 0)),
                   pl.BlockSpec((1, 1, p_pad), lambda i, k: (i, 0, 0)),
                   pl.BlockSpec((1, 1, p_pad), lambda i, k: (i, 0, 0))))

    # Combine per-tile (count, sum, mean-shifted M2) -> batch mean / biased var.
    counts = jnp.minimum(rt, n - jnp.arange(nt) * rt).astype(jnp.float32)[:, None]
    sums = tile_sum[:, 0, :]
    m2s = tile_m2[:, 0, :]
    mean = jnp.sum(sums, axis=0, keepdims=True) / n
    tile_mean = sums / counts
    m2 = (jnp.sum(m2s, axis=0, keepdims=True)
          + jnp.sum(counts * (tile_mean - mean) ** 2, axis=0, keepdims=True))
    var = m2 / n

    scale = params["gamma_p"] * jax.lax.rsqrt(var + eps)
    shift = params["beta_p"] - mean * scale

    # Affine + ReLU pass: purely HBM-bound, row tile sized independently.
    rta = _pick_row_tile(n, p_pad * 16, budget, cap=2048)
    nta = pl.cdiv(n, rta)
    out = pl.pallas_call(
        _affine_relu_kernel,
        out_shape=jax.ShapeDtypeStruct((n, p_pad), jnp.float32),
        grid=(nta,),
        in_specs=[pl.BlockSpec((rta, p_pad), lambda i: (i, 0)),
                  pl.BlockSpec((1, p_pad), lambda i: (0, 0)),
                  pl.BlockSpec((1, p_pad), lambda i: (0, 0))],
        out_specs=pl.BlockSpec((rta, p_pad), lambda i: (i, 0)),
        compiler_params=pltpu.CompilerParams(
            dimension_semantics=("parallel",),
            vmem_limit_bytes=vmem),
    )(h, scale, shift)
    return out[:, :planes]


def histgram_std_basic_block(x, w, b, gamma, beta, running_mean, running_var,
                             *, freeze_bn=False, eps=1e-5, tk=None):
    """Convenience one-shot wrapper (prep + forward)."""
    params = prepare_params(w, b, gamma, beta, running_mean, running_var,
                            freeze_bn=freeze_bn, eps=eps, tk=tk)
    return histgram_std_forward(x, params)


# ------------------------------ reference ------------------------------------

def _reference(x, w, b, gamma, beta, rmean, rvar, freeze_bn, eps=1e-5):
    # Mirrors the kernel's bf16 matmul operands (f32 accumulation) so the
    # comparison checks the Pallas plumbing rather than bf16-vs-f32 rounding.
    xb = x.astype(jnp.bfloat16)
    if freeze_bn:
        s = gamma * jax.lax.rsqrt(rvar + eps)
        wb = (w * s[:, None]).astype(jnp.bfloat16)
        bf = (b - rmean) * s + beta
        h = jnp.dot(xb, wb.T, preferred_element_type=jnp.float32) + bf
        return jnp.maximum(h, 0.0)
    h = jnp.dot(xb, w.astype(jnp.bfloat16).T,
                preferred_element_type=jnp.float32) + b
    mean = jnp.mean(h, axis=0, keepdims=True)
    var = jnp.mean((h - mean) ** 2, axis=0, keepdims=True)
    y = (h - mean) * jax.lax.rsqrt(var + eps) * gamma + beta
    return jnp.maximum(y, 0.0)


if __name__ == "__main__":
    key = jax.random.PRNGKey(0)

    # (N, inplanes, planes, forced tk):
    #  cfg 0: whole-K resident (nk=1), channel pad 24->128, ragged row tiles
    #  cfg 1: forced K tiling (nk=3, ragged last K tile) + ragged row tiles
    configs = [
        (40, 48, 24, None),
        (52, 300, 24, 128),
    ]

    for ci, (N, inplanes, planes, tk) in enumerate(configs):
        k_x, k_w, k_b = jax.random.split(jax.random.fold_in(key, ci), 3)
        x = jax.random.normal(k_x, (N, inplanes), dtype=jnp.float32)

        bound = 1.0 / (inplanes ** 0.5)
        w = jax.random.uniform(k_w, (planes, inplanes), jnp.float32, -bound, bound)
        b = jax.random.uniform(k_b, (planes,), jnp.float32, -bound, bound)

        gamma = jnp.linspace(0.8, 1.2, planes).astype(jnp.float32)
        beta = jnp.linspace(-0.1, 0.1, planes).astype(jnp.float32)
        running_mean = jnp.linspace(-0.2, 0.3, planes).astype(jnp.float32)
        running_var = jnp.linspace(0.5, 1.5, planes).astype(jnp.float32)

        for freeze_bn in (False, True):
            params = prepare_params(w, b, gamma, beta, running_mean,
                                    running_var, freeze_bn=freeze_bn, tk=tk)
            out = jax.block_until_ready(histgram_std_forward(x, params))
            ref = _reference(x, w, b, gamma, beta, running_mean, running_var,
                             freeze_bn)
            assert out.shape == (N, planes)
            err = float(jnp.max(jnp.abs(out - ref)))
            assert err < 1e-3, (
                f"mismatch vs reference (cfg={ci}, freeze_bn={freeze_bn}): {err}")

    print("KERNEL_OK")
</pallas_src>

<mosaic_0001>
module attributes {stable_mosaic.version = 11 : i64} {
  func.func @_linear_stats_kernel(%arg0: i32, %arg1: i32, %arg2: memref<32x48xf32, #tpu.memory_space<vmem>>, %arg3: memref<48x128xbf16, #tpu.memory_space<vmem>>, %arg4: memref<1x128xf32, #tpu.memory_space<vmem>>, %arg5: memref<32x128xf32, #tpu.memory_space<vmem>>, %arg6: memref<1x1x128xf32, #tpu.memory_space<vmem>>, %arg7: memref<1x1x128xf32, #tpu.memory_space<vmem>>, %arg8: memref<32x128xf32, #tpu.memory_space<vmem>>) attributes {dimension_semantics = [#tpu.dimension_semantics<parallel>, #tpu.dimension_semantics<arbitrary>], iteration_bounds = array<i64: 2, 1>, scalar_prefetch = 0 : i64, scratch_operands = 1 : i64, tpu.core_type = #tpu.core_type<tc>, window_params = [{transform_indices = @transform_0, window_bounds = array<i64: 32, 48>}, {pipeline_mode = #tpu.pipeline_mode<synchronous>, transform_indices = @transform_1, window_bounds = array<i64: 48, 128>}, {pipeline_mode = #tpu.pipeline_mode<synchronous>, transform_indices = @transform_2, window_bounds = array<i64: 1, 128>}, {transform_indices = @transform_3, window_bounds = array<i64: 32, 128>}, {transform_indices = @transform_4, window_bounds = array<i64: 1, 1, 128>}, {transform_indices = @transform_5, window_bounds = array<i64: 1, 1, 128>}]} {
    %c0_i32 = arith.constant 0 : i32
    %0 = arith.cmpi eq, %arg1, %c0_i32 : i32
    %1 = arith.extui %0 : i1 to i32
    %c0_i32_0 = arith.constant 0 : i32
    %2 = arith.cmpi ne, %1, %c0_i32_0 : i32
    scf.if %2 {
      %cst_10 = arith.constant 0.000000e+00 : f32
      %13 = vector.broadcast %cst_10 : f32 to vector<32x128xf32>
      %c0_11 = arith.constant 0 : index
      %c0_12 = arith.constant 0 : index
      %14 = vector.load %arg8[%c0_11, %c0_12] : memref<32x128xf32, #tpu.memory_space<vmem>>, vector<32x128xf32>
      tpu.vector_store %arg8[%c0_11, %c0_12], %13 {strides = array<i32>} : memref<32x128xf32, #tpu.memory_space<vmem>>, vector<32x128xf32>,
    } else {
    }
    %c0 = arith.constant 0 : index
    %c0_1 = arith.constant 0 : index
    %3 = vector.load %arg2[%c0, %c0_1] : memref<32x48xf32, #tpu.memory_space<vmem>>, vector<32x48xf32>
    %c0_2 = arith.constant 0 : index
    %c0_3 = arith.constant 0 : index
    %4 = vector.load %arg8[%c0_2, %c0_3] : memref<32x128xf32, #tpu.memory_space<vmem>>, vector<32x128xf32>
    %5 = arith.truncf %3 : vector<32x48xf32> to vector<32x48xbf16>
    %c0_4 = arith.constant 0 : index
    %c0_5 = arith.constant 0 : index
    %6 = vector.load %arg3[%c0_4, %c0_5] : memref<48x128xbf16, #tpu.memory_space<vmem>>, vector<48x128xbf16>
    %cst = arith.constant dense<0.000000e+00> : vector<32x128xf32>
    %7 = tpu.matmul %5, %6, %cst {dimension_numbers = #tpu.dot_dimension_numbers<[1], [0], [0], [1], [0, 0, 1, 1], [], []>} : vector<32x48xbf16>, vector<48x128xbf16>, vector<32x128xf32> -> vector<32x128xf32>
    %8 = arith.addf %4, %7 : vector<32x128xf32>
    %c0_6 = arith.constant 0 : index
    %c0_7 = arith.constant 0 : index
    %9 = vector.load %arg8[%c0_6, %c0_7] : memref<32x128xf32, #tpu.memory_space<vmem>>, vector<32x128xf32>
    tpu.vector_store %arg8[%c0_6, %c0_7], %8 {strides = array<i32>} : memref<32x128xf32, #tpu.memory_space<vmem>>, vector<32x128xf32>,
    %c0_i32_8 = arith.constant 0 : i32
    %10 = arith.cmpi eq, %arg1, %c0_i32_8 : i32
    %11 = arith.extui %10 : i1 to i32
    %c0_i32_9 = arith.constant 0 : i32
    %12 = arith.cmpi ne, %11, %c0_i32_9 : i32
    scf.if %12 {
      %c0_10 = arith.constant 0 : index
      %c0_11 = arith.constant 0 : index
      %13 = vector.load %arg8[%c0_10, %c0_11] : memref<32x128xf32, #tpu.memory_space<vmem>>, vector<32x128xf32>
      %c0_12 = arith.constant 0 : index
      %c0_13 = arith.constant 0 : index
      %14 = vector.load %arg4[%c0_12, %c0_13] : memref<1x128xf32, #tpu.memory_space<vmem>>, vector<1x128xf32>
      %15 = vector.broadcast %14 : vector<1x128xf32> to vector<32x128xf32>
      %16 = arith.addf %13, %15 : vector<32x128xf32>
      %c0_14 = arith.constant 0 : index
      %c0_15 = arith.constant 0 : index
      %17 = vector.load %arg5[%c0_14, %c0_15] : memref<32x128xf32, #tpu.memory_space<vmem>>, vector<32x128xf32>
      tpu.vector_store %arg5[%c0_14, %c0_15], %16 {strides = array<i32>} : memref<32x128xf32, #tpu.memory_space<vmem>>, vector<32x128xf32>,
      %18 = tpu.iota {dimensions = array<i32: 0>} : vector<32x1xi32>
      %c32_i32 = arith.constant 32 : i32
      %19 = arith.muli %arg0, %c32_i32 : i32
      %20 = vector.broadcast %19 : i32 to vector<32x1xi32>
      %21 = arith.addi %18, %20 : vector<32x1xi32>
      %c40_i32 = arith.constant 40 : i32
      %22 = vector.broadcast %c40_i32 : i32 to vector<32x1xi32>
      %23 = arith.cmpi slt, %21, %22 : vector<32x1xi32>
      %c32_i32_16 = arith.constant 32 : i32
      %24 = arith.muli %arg0, %c32_i32_16 : i32
      %c40_i32_17 = arith.constant 40 : i32
      %25 = arith.subi %c40_i32_17, %24 : i32
      %c32_i32_18 = arith.constant 32 : i32
      %26 = arith.minsi %c32_i32_18, %25 : i32
      %27 = arith.sitofp %26 : i32 to f32
      %cst_19 = arith.constant 0.000000e+00 : f32
      %28 = vector.shape_cast %23 : vector<32x1xi1> to vector<32x1xi1>
      %29 = vector.broadcast %28 : vector<32x1xi1> to vector<32x128xi1>
      %30 = vector.broadcast %cst_19 : f32 to vector<32x128xf32>
      %31 = arith.select %29, %16, %30 : vector<32x128xi1>, vector<32x128xf32>
      %cst_20 = arith.constant dense<0.000000e+00> : vector<128xf32>
      %32 = vector.multi_reduction <add>, %31, %cst_20 [0] : vector<32x128xf32> to vector<128xf32>
      %33 = vector.shape_cast %32 : vector<128xf32> to vector<1x128xf32>
      %34 = vector.broadcast %27 : f32 to vector<1x128xf32>
      %35 = arith.divf %33, %34 : vector<1x128xf32>
      %36 = vector.broadcast %35 : vector<1x128xf32> to vector<32x128xf32>
      %37 = arith.subf %16, %36 : vector<32x128xf32>
      %cst_21 = arith.constant 0.000000e+00 : f32
      %38 = vector.shape_cast %23 : vector<32x1xi1> to vector<32x1xi1>
      %39 = vector.broadcast %38 : vector<32x1xi1> to vector<32x128xi1>
      %40 = vector.broadcast %cst_21 : f32 to vector<32x128xf32>
      %41 = arith.select %39, %37, %40 : vector<32x128xi1>, vector<32x128xf32>
      %42 = vector.shape_cast %33 : vector<1x128xf32> to vector<1x1x128xf32>
      %c0_22 = arith.constant 0 : index
      %c0_23 = arith.constant 0 : index
      %c0_24 = arith.constant 0 : index
      %43 = vector.load %arg6[%c0_22, %c0_23, %c0_24] : memref<1x1x128xf32, #tpu.memory_space<vmem>>, vector<1x1x128xf32>
      tpu.vector_store %arg6[%c0_22, %c0_23, %c0_24], %42 {strides = array<i32>} : memref<1x1x128xf32, #tpu.memory_space<vmem>>, vector<1x1x128xf32>,
      %44 = arith.mulf %41, %41 : vector<32x128xf32>
      %cst_25 = arith.constant dense<0.000000e+00> : vector<128xf32>
      %45 = vector.multi_reduction <add>, %44, %cst_25 [0] : vector<32x128xf32> to vector<128xf32>
      %46 = vector.shape_cast %45 : vector<128xf32> to vector<1x128xf32>
      %47 = vector.shape_cast %46 : vector<1x128xf32> to vector<1x1x128xf32>
      %c0_26 = arith.constant 0 : index
      %c0_27 = arith.constant 0 : index
      %c0_28 = arith.constant 0 : index
      %48 = vector.load %arg7[%c0_26, %c0_27, %c0_28] : memref<1x1x128xf32, #tpu.memory_space<vmem>>, vector<1x1x128xf32>
      tpu.vector_store %arg7[%c0_26, %c0_27, %c0_28], %47 {strides = array<i32>} : memref<1x1x128xf32, #tpu.memory_space<vmem>>, vector<1x1x128xf32>,
    } else {
    }
    return
  }
  func.func @transform_0(%arg0: i32, %arg1: i32) -> (i32, i32) {
    %c0_i32 = arith.constant 0 : i32
    return %arg0, %arg1 : i32, i32
  }
  func.func @transform_1(%arg0: i32, %arg1: i32) -> (i32, i32) {
    %c0_i32 = arith.constant 0 : i32
    %c0_i32_0 = arith.constant 0 : i32
    return %arg1, %c0_i32 : i32, i32
  }
  func.func @transform_2(%arg0: i32, %arg1: i32) -> (i32, i32) {
    %c0_i32 = arith.constant 0 : i32
    %c0_i32_0 = arith.constant 0 : i32
    %c0_i32_1 = arith.constant 0 : i32
    return %c0_i32, %c0_i32_0 : i32, i32
  }
  func.func @transform_3(%arg0: i32, %arg1: i32) -> (i32, i32) {
    %c0_i32 = arith.constant 0 : i32
    %c0_i32_0 = arith.constant 0 : i32
    return %arg0, %c0_i32 : i32, i32
  }
  func.func @transform_4(%arg0: i32, %arg1: i32) -> (i32, i32, i32) {
    %c0_i32 = arith.constant 0 : i32
    %c0_i32_0 = arith.constant 0 : i32
    %c0_i32_1 = arith.constant 0 : i32
    return %arg0, %c0_i32, %c0_i32_0 : i32, i32, i32
  }
  func.func @transform_5(%arg0: i32, %arg1: i32) -> (i32, i32, i32) {
    %c0_i32 = arith.constant 0 : i32
    %c0_i32_0 = arith.constant 0 : i32
    %c0_i32_1 = arith.constant 0 : i32
    return %arg0, %c0_i32, %c0_i32_0 : i32, i32, i32
  }
}

module attributes {stable_mosaic.version = 11 : i64} {
  func.func @_linear_stats_kernel(%arg0: i32, %arg1: i32, %arg2: memref<32x48xf32, #tpu.memory_space<vmem>>, %arg3: memref<48x128xbf16, #tpu.memory_space<vmem>>, %arg4: memref<1x128xf32, #tpu.memory_space<vmem>>, %arg5: memref<32x128xf32, #tpu.memory_space<vmem>>, %arg6: memref<1x1x128xf32, #tpu.memory_space<vmem>>, %arg7: memref<1x1x128xf32, #tpu.memory_space<vmem>>, %arg8: memref<32x128xf32, #tpu.memory_space<vmem>>) attributes {dimension_semantics = [#tpu.dimension_semantics<parallel>, #tpu.dimension_semantics<arbitrary>], iteration_bounds = array<i64: 2, 1>, scalar_prefetch = 0 : i64, scratch_operands = 1 : i64, tpu.core_type = #tpu.core_type<tc>, window_params = [{transform_indices = @transform_0, window_bounds = array<i64: 32, 48>}, {transform_indices = @transform_1, window_bounds = array<i64: 48, 128>}, {pipeline_mode = #tpu.pipeline_mode<synchronous>, transform_indices = @transform_2, window_bounds = array<i64: 1, 128>}, {transform_indices = @transform_3, window_bounds = array<i64: 32, 128>}, {transform_indices = @transform_4, window_bounds = array<i64: 1, 1, 128>}, {transform_indices = @transform_5, window_bounds = array<i64: 1, 1, 128>}]} {
    %c0_i32 = arith.constant 0 : i32
    %0 = arith.cmpi eq, %arg1, %c0_i32 : i32
    %1 = arith.extui %0 : i1 to i32
    %c0_i32_0 = arith.constant 0 : i32
    %2 = arith.cmpi ne, %1, %c0_i32_0 : i32
    scf.if %2 {
      %cst_10 = arith.constant 0.000000e+00 : f32
      %13 = vector.broadcast %cst_10 : f32 to vector<32x128xf32>
      %c0_11 = arith.constant 0 : index
      %c0_12 = arith.constant 0 : index
      %14 = vector.load %arg8[%c0_11, %c0_12] : memref<32x128xf32, #tpu.memory_space<vmem>>, vector<32x128xf32>
      tpu.vector_store %arg8[%c0_11, %c0_12], %13 {strides = array<i32>} : memref<32x128xf32, #tpu.memory_space<vmem>>, vector<32x128xf32>,
    } else {
    }
    %c0 = arith.constant 0 : index
    %c0_1 = arith.constant 0 : index
    %3 = vector.load %arg2[%c0, %c0_1] : memref<32x48xf32, #tpu.memory_space<vmem>>, vector<32x48xf32>
    %c0_2 = arith.constant 0 : index
    %c0_3 = arith.constant 0 : index
    %4 = vector.load %arg8[%c0_2, %c0_3] : memref<32x128xf32, #tpu.memory_space<vmem>>, vector<32x128xf32>
    %5 = arith.truncf %3 : vector<32x48xf32> to vector<32x48xbf16>
    %c0_4 = arith.constant 0 : index
    %c0_5 = arith.constant 0 : index
    %6 = vector.load %arg3[%c0_4, %c0_5] : memref<48x128xbf16, #tpu.memory_space<vmem>>, vector<48x128xbf16>
    %cst = arith.constant dense<0.000000e+00> : vector<32x128xf32>
    %7 = tpu.matmul %5, %6, %cst {dimension_numbers = #tpu.dot_dimension_numbers<[1], [0], [0], [1], [0, 0, 1, 1], [], []>} : vector<32x48xbf16>, vector<48x128xbf16>, vector<32x128xf32> -> vector<32x128xf32>
    %8 = arith.addf %4, %7 : vector<32x128xf32>
    %c0_6 = arith.constant 0 : index
    %c0_7 = arith.constant 0 : index
    %9 = vector.load %arg8[%c0_6, %c0_7] : memref<32x128xf32, #tpu.memory_space<vmem>>, vector<32x128xf32>
    tpu.vector_store %arg8[%c0_6, %c0_7], %8 {strides = array<i32>} : memref<32x128xf32, #tpu.memory_space<vmem>>, vector<32x128xf32>,
    %c0_i32_8 = arith.constant 0 : i32
    %10 = arith.cmpi eq, %arg1, %c0_i32_8 : i32
    %11 = arith.extui %10 : i1 to i32
    %c0_i32_9 = arith.constant 0 : i32
    %12 = arith.cmpi ne, %11, %c0_i32_9 : i32
    scf.if %12 {
      %c0_10 = arith.constant 0 : index
      %c0_11 = arith.constant 0 : index
      %13 = vector.load %arg8[%c0_10, %c0_11] : memref<32x128xf32, #tpu.memory_space<vmem>>, vector<32x128xf32>
      %c0_12 = arith.constant 0 : index
      %c0_13 = arith.constant 0 : index
      %14 = vector.load %arg4[%c0_12, %c0_13] : memref<1x128xf32, #tpu.memory_space<vmem>>, vector<1x128xf32>
      %15 = vector.broadcast %14 : vector<1x128xf32> to vector<32x128xf32>
      %16 = arith.addf %13, %15 : vector<32x128xf32>
      %c0_14 = arith.constant 0 : index
      %c0_15 = arith.constant 0 : index
      %17 = vector.load %arg5[%c0_14, %c0_15] : memref<32x128xf32, #tpu.memory_space<vmem>>, vector<32x128xf32>
      tpu.vector_store %arg5[%c0_14, %c0_15], %16 {strides = array<i32>} : memref<32x128xf32, #tpu.memory_space<vmem>>, vector<32x128xf32>,
      %18 = tpu.iota {dimensions = array<i32: 0>} : vector<32x1xi32>
      %c32_i32 = arith.constant 32 : i32
      %19 = arith.muli %arg0, %c32_i32 : i32
      %20 = vector.broadcast %19 : i32 to vector<32x1xi32>
      %21 = arith.addi %18, %20 : vector<32x1xi32>
      %c40_i32 = arith.constant 40 : i32
      %22 = vector.broadcast %c40_i32 : i32 to vector<32x1xi32>
      %23 = arith.cmpi slt, %21, %22 : vector<32x1xi32>
      %c32_i32_16 = arith.constant 32 : i32
      %24 = arith.muli %arg0, %c32_i32_16 : i32
      %c40_i32_17 = arith.constant 40 : i32
      %25 = arith.subi %c40_i32_17, %24 : i32
      %c32_i32_18 = arith.constant 32 : i32
      %26 = arith.minsi %c32_i32_18, %25 : i32
      %27 = arith.sitofp %26 : i32 to f32
      %cst_19 = arith.constant 0.000000e+00 : f32
      %28 = vector.shape_cast %23 : vector<32x1xi1> to vector<32x1xi1>
      %29 = vector.broadcast %28 : vector<32x1xi1> to vector<32x128xi1>
      %30 = vector.broadcast %cst_19 : f32 to vector<32x128xf32>
      %31 = arith.select %29, %16, %30 : vector<32x128xi1>, vector<32x128xf32>
      %cst_20 = arith.constant dense<0.000000e+00> : vector<128xf32>
      %32 = vector.multi_reduction <add>, %31, %cst_20 [0] : vector<32x128xf32> to vector<128xf32>
      %33 = vector.shape_cast %32 : vector<128xf32> to vector<1x128xf32>
      %34 = vector.broadcast %27 : f32 to vector<1x128xf32>
      %35 = arith.divf %33, %34 : vector<1x128xf32>
      %36 = vector.broadcast %35 : vector<1x128xf32> to vector<32x128xf32>
      %37 = arith.subf %16, %36 : vector<32x128xf32>
      %cst_21 = arith.constant 0.000000e+00 : f32
      %38 = vector.shape_cast %23 : vector<32x1xi1> to vector<32x1xi1>
      %39 = vector.broadcast %38 : vector<32x1xi1> to vector<32x128xi1>
      %40 = vector.broadcast %cst_21 : f32 to vector<32x128xf32>
      %41 = arith.select %39, %37, %40 : vector<32x128xi1>, vector<32x128xf32>
      %42 = vector.shape_cast %33 : vector<1x128xf32> to vector<1x1x128xf32>
      %c0_22 = arith.constant 0 : index
      %c0_23 = arith.constant 0 : index
      %c0_24 = arith.constant 0 : index
      %43 = vector.load %arg6[%c0_22, %c0_23, %c0_24] : memref<1x1x128xf32, #tpu.memory_space<vmem>>, vector<1x1x128xf32>
      tpu.vector_store %arg6[%c0_22, %c0_23, %c0_24], %42 {strides = array<i32>} : memref<1x1x128xf32, #tpu.memory_space<vmem>>, vector<1x1x128xf32>,
      %44 = arith.mulf %41, %41 : vector<32x128xf32>
      %cst_25 = arith.constant dense<0.000000e+00> : vector<128xf32>
      %45 = vector.multi_reduction <add>, %44, %cst_25 [0] : vector<32x128xf32> to vector<128xf32>
      %46 = vector.shape_cast %45 : vector<128xf32> to vector<1x128xf32>
      %47 = vector.shape_cast %46 : vector<1x128xf32> to vector<1x1x128xf32>
      %c0_26 = arith.constant 0 : index
      %c0_27 = arith.constant 0 : index
      %c0_28 = arith.constant 0 : index
      %48 = vector.load %arg7[%c0_26, %c0_27, %c0_28] : memref<1x1x128xf32, #tpu.memory_space<vmem>>, vector<1x1x128xf32>
      tpu.vector_store %arg7[%c0_26, %c0_27, %c0_28], %47 {strides = array<i32>} : memref<1x1x128xf32, #tpu.memory_space<vmem>>, vector<1x1x128xf32>,
    } else {
    }
    return
  }
  func.func @transform_0(%arg0: i32, %arg1: i32) -> (i32, i32) {
    %c0_i32 = arith.constant 0 : i32
    return %arg0, %arg1 : i32, i32
  }
  func.func @transform_1(%arg0: i32, %arg1: i32) -> (i32, i32) {
    %c0_i32 = arith.constant 0 : i32
    %c0_i32_0 = arith.constant 0 : i32
    return %arg1, %c0_i32 : i32, i32
  }
  func.func @transform_2(%arg0: i32, %arg1: i32) -> (i32, i32) {
    %c0_i32 = arith.constant 0 : i32
    %c0_i32_0 = arith.constant 0 : i32
    %c0_i32_1 = arith.constant 0 : i32
    return %c0_i32, %c0_i32_0 : i32, i32
  }
  func.func @transform_3(%arg0: i32, %arg1: i32) -> (i32, i32) {
    %c0_i32 = arith.constant 0 : i32
    %c0_i32_0 = arith.constant 0 : i32
    return %arg0, %c0_i32 : i32, i32
  }
  func.func @transform_4(%arg0: i32, %arg1: i32) -> (i32, i32, i32) {
    %c0_i32 = arith.constant 0 : i32
    %c0_i32_0 = arith.constant 0 : i32
    %c0_i32_1 = arith.constant 0 : i32
    return %arg0, %c0_i32, %c0_i32_0 : i32, i32, i32
  }
  func.func @transform_5(%arg0: i32, %arg1: i32) -> (i32, i32, i32) {
    %c0_i32 = arith.constant 0 : i32
    %c0_i32_0 = arith.constant 0 : i32
    %c0_i32_1 = arith.constant 0 : i32
    return %arg0, %c0_i32, %c0_i32_0 : i32, i32, i32
  }
}

</mosaic_0001>

<bundles_post_ra>
// kernel: tpu_custom_call.1
= control target key start
LH: loop header
LB: loop body
LE: loop exit
PB: predicated region body
PF: predicated region fallthrough
CT: control target
= control target key end

     0   :  { %11 = vsyncpa [#allocation4], 0  ;;  %s1367_s0 = inlined_call_operand.hbm [shape: f32[40,48], index: 0, kind: input, shape index: {}]   ;;  %s1368_s1 = inlined_call_operand.hbm [shape: bf16[48,128], index: 1, kind: input, shape index: {}]   ;;  %s1369_s2 = inlined_call_operand.vmem [shape: f32[1,128], index: 2, kind: input, shape index: {}]   ;;  %s1370_s3 = inlined_call_operand.hbm [shape: f32[40,128], index: 3, kind: output, shape index: {0}]   ;;  %s1371_s4 = inlined_call_operand.hbm [shape: f32[2,1,128], index: 4, kind: output, shape index: {1}]   ;;  %s1372_s5 = inlined_call_operand.hbm [shape: f32[2,1,128], index: 5, kind: output, shape index: {2}]  }
   0x1   :  { %13 = vsyncpa [#allocation4 + $0x1], 0 }
   0x2   :  { %14 = vsyncpa [#allocation7], 0 }
   0x3   :  { %15 = vsyncpa [#allocation5], 0 }
   0x4   :  { %17 = vsyncpa [#allocation5 + $0x1], 0 }
   0x5   :  { %18 = vsyncpa [#allocation10], 0 }
   0x6   :  { %20 = vsyncpa [#allocation10 + $0x1], 0  ;;  %s1084_s18 = smov 0   ;;  %s1086_s19 = smov 0  }
   0x7   :  { %s1088_s20 = smov 0   ;;  %s1090_s21 = smov 0  }
   0x8   :  { %s1092_s22 = smov 0   ;;  %s1094_s23 = smov 0  }
   0x9 LB: > { %s1115_s24 = sadd.s32 4294967295, %s1041_s23   ;;  %s1375_s25 = sadd.s32 4294967294, %s1041_s23   ;;  %s1041_s23 = sphi %s1094_s23, %s26_s23   ;;  %s1037_s22 = sphi %s1092_s22, %s1392_s22   ;;  %s1033_s21 = sphi %s1090_s21, %s1391_s21   ;;  %s1029_s20 = sphi %s1088_s20, %s1390_s20   ;;  %s1025_s19 = sphi %s1086_s19, %s1389_s19   ;;  %s1021_s18 = sphi %s1084_s18, %s1388_s18  }
   0xa   : > { %s38_s26 = sadd.s32 1, %s1037_s22  ;;  %s47_s27 = sadd.s32 1, %s1029_s20 }
   0xb   : > { %p40_p0 = scmp.ge.s32.totalorder %s38_s26, 2  ;;  %p54_p1 = scmp.ne.s32.totalorder %s1029_s20, %s1025_s19 }
   0xc   : > { %p55_p2 = scmp.eq.s32.totalorder %s1041_s23, 0  ;;  %p60_p3 = scmp.ne.s32.totalorder %s1025_s19, %s1021_s18 }
   0xd   : > { %s1394_s26 = smov (%p40_p0, %s38_s26), 0  ;;  %p61_p5 = scmp.eq.s32.totalorder %s1115_s24, 0 }
   0xe   : > { %p1127_p4 = por %p55_p2, %p54_p1  ;;  %s42_s29 = ssub.s32 %s1037_s22, %s1394_s26 }
   0xf   : > { %p131_p6 = scmp.eq.s32.totalorder %s1115_s24, 1  ;;  %p45_p7 = scmp.eq.s32.totalorder %s42_s29, 0 }
  0x10   : > { %p1137_p8 = por %p61_p5, %p60_p3  ;;  %p137_p10 = scmp.eq.s32.totalorder %s1375_s25, 1 }
  0x11   : > { %p1141_p9 = por %p131_p6, %p54_p1  ;;  %p713_p12 = scmp.ge.s32.totalorder %s1041_s23, 1 }
  0x12   : > { %s1378_s30 = scalar_select %p1137_p8, 1, 0 }
  0x13   : > { %s1379_s6 = scalar_select %p1141_p9, 1, 0 }
  0x14   : > { %s1148_s7 = scalar_select %p45_p7, %s1029_s20, %s47_s27  }
  0x15   : > { %p1150_p11 = por %p137_p10, %p60_p3  ;;  %p196_p13 = scmp.lt.s32.totalorder %s1041_s23, 3 }
  0x16   : > { %s1043_s10 = smov [#allocation6]  }
  0x17   : > { %s1380_s8 = scalar_select %p1150_p11, 1, 0 }
  0x18   : > { %p1156_p0 = pnand %p713_p12, %p196_p13  ;;  %s211_s11 = sshll.u32 %s1043_s10, 4  ;;  %s212_s11 = int_to_ptr.vmem [resolvable:$true] %s211_s11 }
  0x19   : > { %s860_s12 = scalar_lea.vmem %s212_s11, 384  ;;  %p868_p11 = scmp.lt.s32.totalorder %s212_s11, %s212_s11 }
  0x1a   : > { %p772_p1 = pneg %p1156_p0  ;;  %p861_p3 = scmp.ne.s32.totalorder %s212_s11, %s860_s12 }
  0x1b   : > { %p869_p9 = scmp.lt.s32.totalorder %s860_s12, %s860_s12 }
  0x1c   : > { %p773_p2 = pnand %p772_p1, %p61_p5 }
  0x1d   : > { %p870_p8 = por %p869_p9, %p868_p11 }
  0x1e   : > { %p851_p6 = pneg %p773_p2 }
  0x20   : > { %p863_p7 = pnand %p861_p3, %p851_p6 }
  0x22   : > { %p864_p10 = pneg %p863_p7 }
  0x24   : > { %p871_p12 = pnand %p870_p8, %p864_p10 }
  0x26   : > { %874 = shalt.err (!%p871_p12)
}
  0x27   : > { %s1044_s13 = smov 64   ;;  %s1045_s14 = smov 4  }
  0x28   : > { %775 = dma.hbm_to_vmem [thread:$0]  (!%p773_p2), %s1368_s1, 384, %s212_s11, [#allocation7], %s1044_s13, %s1044_s13, %s1045_s14  }
  0x29   : > { %p715_p13 = scmp.ge.s32.totalorder %s1041_s23, 2 }
  0x2b   : > { %224 = sbr.rel (%p715_p13) target bundleno = 80 (0x50), region = 24 }
  0x30   : > { %227 = sbr.rel (!%p1127_p4) target bundleno = 80 (0x50), region = 28  ;;  %s228_s17 = sand.u32 (%p1127_p4), 1, %s1029_s20  }
  0x31   : > { %s717_s27 = sshll.u32 (%p1127_p4), %s1037_s22, 2  ;;  %s716_s29 = sshll.u32 (%p1127_p4), %s228_s17, 5 }
  0x32   : > { %s234_s10 = ssub.s32 (%p1127_p4), 5, %s717_s27  ;;  %s1177_s13 = scalar_lea.sflag (%p1127_p4), [#allocation4], %s228_s17 }
  0x33   : > { %p235_p8 = scmp.lt.s32.totalorder (%p1127_p4), %s234_s10, 4  ;;  %s232_s14 = scalar_lea.vmem (%p1127_p4), [#allocation3], %s716_s29 }
  0x35   : > { %s1396_s10 = smov (!%p235_p8, %s234_s10), 4 }
  0x36   : > { %s1174_s12 = sshll.u32 %s1396_s10, 7 }
  0x37   : > { %s239_s11 = ssub.s32 512, %s1174_s12 }
  0x38   : > { %240 = vsyncadd %s1177_s13, %s239_s11  ;;  %p719_p4 = scmp.ne.s32.totalorder %s1174_s12, 0  ;;  %s745_s28 = sshll.u32 %s1037_s22, 9 }
  0x39   : > { %s1185_s27 = scalar_lea.hbm %s1367_s0, %s745_s28  ;;  %s246_s10 = sshll.u32 %s232_s14, 4  ;;  %s1187_s10 = int_to_ptr.vmem [resolvable:$true] %s246_s10 }
  0x3a   : > { %s875_s17 = scalar_lea.hbm %s1185_s27, %s1174_s12  ;;  %s879_s25 = scalar_lea.hbm %s1367_s0, 640 }
  0x3b   : > { %p876_p9 = scmp.ne.s32.totalorder %s1185_s27, %s875_s17  ;;  %p881_p2 = scmp.lt.s32.totalorder %s879_s25, %s875_s17 }
  0x3d   : > { %p877_p11 = pnand %p876_p9, %p719_p4 }
  0x3f   : > { %p878_p1 = pneg %p877_p11 }
  0x41   : > { %p883_p6 = pnand %p881_p2, %p878_p1 }
  0x43   : > { %886 = shalt.err (!%p883_p6)
}
  0x44   : > { %s887_s14 = scalar_lea.vmem %s1187_s10, %s1174_s12  ;;  %s1046_s28 = smov [#allocation3]  }
  0x45   : > { %p888_p3 = scmp.ne.s32.totalorder %s1187_s10, %s887_s14  ;;  %s891_s15 = sshll.u32 %s1046_s28, 4  ;;  %s892_s15 = int_to_ptr.vmem [resolvable:$false] %s891_s15 }
  0x46   : > { %s893_s16 = scalar_lea.vmem %s892_s15, 1024  ;;  %p894_p12 = scmp.lt.s32.totalorder %s1187_s10, %s892_s15 }
  0x47   : > { %p889_p7 = pnand %p888_p3, %p719_p4  ;;  %p895_p8 = scmp.lt.s32.totalorder %s893_s16, %s887_s14 }
  0x49   : > { %p890_p10 = pneg %p889_p7  ;;  %p896_p9 = por %p895_p8, %p894_p12 }
  0x4b   : > { %p897_p11 = pnand %p896_p9, %p890_p10 }
  0x4d   : > { %900 = shalt.err (!%p897_p11)
}
  0x4e   : > { %s1047_s25 = smov 128   ;;  %s1048_s17 = smov 8  }
  0x4f   : > { %252 = dma.hbm_to_vmem [thread:$0]  (%p719_p4), %s1185_s27, %s1174_s12, %s1187_s10, %s1177_s13, %s1047_s25, %s1047_s25, %s1048_s17  }
  0x50 PF: > { %258 = sbr.rel (%p1156_p0) target bundleno = 421 (0x1a5), region = 32  ;;  %s1212_s29 = sand.u32 (!%p1156_p0), 1, %s1025_s19  }
  0x51   : > { %s724_s11 = sshll.u32 (!%p1156_p0), %s1212_s29, 5  ;;  %s261_s14 = scalar_lea.sflag (!%p1156_p0), [#allocation4], %s1212_s29 }
  0x52   : > { %s264_s28 = scalar_lea.vmem (!%p1156_p0), [#allocation3], %s724_s11  ;;  %p1382_p1 = scmp.ne.s32.totalorder (!%p1156_p0), %s1378_s30, 0 }
  0x55   : > { %1004 = dma.done.wait (%p1382_p1), %s261_s14, 512  }
  0x56   : > { %1006 = vsyncadd (%p1382_p1), %s261_s14, 4294966784 }
  0x57   : > { %1008 = dma.done.wait (%p61_p5), [#allocation7], 384  }
  0x58   : > { %1010 = vsyncadd (%p61_p5), [#allocation7], 4294966912  ;;  %v844_v0 = vld [vmem:[#allocation6 + $0x10] sm:$0xff]   ;;  %v845_v1 = vld [vmem:[#allocation6 + $0x8] sm:$0xff]   ;;  %vm357_vm0 = vcmask 392192   ;;  %s514_s30 = sand.u32 1, %s1115_s24   ;;  %v443_v9 = vlaneseq }
  0x59   : > { %752 = vmatprep.subr.bf16.mxu0 %v844_v0  ;;  %v323_v2 = vld [vmem:[%s264_s28] sm:$0xff]  ;;  %v324_v3 = vld [vmem:[%s264_s28 + $0x8] sm:$0xff]  ;;  %v325_v6 = vld [vmem:[%s264_s28 + $0x10] sm:$0xff]  ;;  %s733_s9 = sshll.u32 %s1033_s21, 5  ;;  %s1233_s10 = scalar_lea.vmem [#allocation8], %s724_s11 }
  0x5a   : > { %753 = vmatpush3.bf16.msra.mxu0 %v844_v0  ;;  %v846_v4 = vld [vmem:[#allocation6] sm:$0xff]   ;;  %v331_v5 = vpack.c.bf16 %v324_v3, %v323_v2  ;;  %v326_v7 = vld [vmem:[%s264_s28 + $0x18] sm:$0xff]  ;;  %s458_s12 = ssub.s32 40, %s733_s9  ;;  %v444_v10 = vshrl.u32 %v443_v9, 7  ;;  %v449_v16 = vstv %s733_s9  ;;  %s296_s16 = scalar_lea.vmem [#allocation9], %s1212_s29 }
  0x5b   : > { %754 = vmatprep.subr.bf16.mxu0 %v845_v1  ;;  %v332_v8 = vpack.c.bf16 %v326_v7, %v325_v6  ;;  %p459_p5 = scmp.lt.s32.totalorder %s458_s12, 32  ;;  %v732_v11 = vld [vmem:[%s1369_s2] ss:$0 sm:$0xff]  ;;  %s1376_s25 = scalar_lea.vmem [#allocation11], %s1212_s29 }
  0x5c   : > { %758 = vmatprep.mubr.msk.bf16.mxu0 %vm357_vm0, %v331_v5  ;;  %v445_v12 = vadd.s32 8, %v444_v10  ;;  %v446_v14 = vadd.s32 16, %v444_v10  ;;  %v450_v18 = vadd.s32 %v449_v16, %v444_v10  ;;  %v447_v19 = vadd.s32 24, %v444_v10  ;;  %s510_s17 = scalar_lea.sflag [#allocation5], %s1212_s29  ;;  %s1256_s11 = scalar_lea.sflag [#allocation10], %s514_s30 }
  0x5d   : > { %s1398_s12 = smov (!%p459_p5, %s458_s12), 32  ;;  %p1383_p0 = scmp.ne.s32.totalorder %s1379_s6, 0 }
  0x5e   : > { %755 = vmatpush3.bf16.msra.mxu0 %v845_v1  ;;  %v451_v20 = vadd.s32 %v449_v16, %v445_v12  ;;  %v452_v22 = vadd.s32 %v449_v16, %v446_v14  ;;  %s461_s15 = scvt.s32.f32 %s1398_s12  ;;  %vm454_vm1 = vcmp.lt.s32.totalorder %v450_v18, 40  ;;  %v453_v25 = vadd.s32 %v449_v16, %v447_v19  ;;  %s735_s14 = sshll.u32 (%p1383_p0), %s1033_s21, 2 }
  0x5f   : > { %756 = vmatprep.subr.bf16.mxu0 %v846_v4  ;;  %s526_s28 = ssub.s32 (%p1383_p0), 5, %s735_s14 }
  0x60   : > { %vm455_vm2 = vcmp.lt.s32.totalorder %v451_v20, 40  ;;  %vm456_vm3 = vcmp.lt.s32.totalorder %v452_v22, 40  ;;  %v483_v28 = vstv %s461_s15  ;;  %vm457_vm4 = vcmp.lt.s32.totalorder %v453_v25, 40  ;;  %p527_p4 = scmp.lt.s32.totalorder (%p1383_p0), %s526_s28, 4 }
  0x61   : > { %847 = vrcp.f32 %v483_v28 }
  0x62   : > { %757 = vmatpush3.bf16.msra.mxu0 %v846_v4 }
  0x65   : > { %759 = vmatmul.mubr.msk.bf16.vlgmr.msra.gmra.mxu0 %vm357_vm0, %v332_v8 }
  0x6e   : > { %v848_v41 = vpop.eup %847 }
 0x125   : > { %v760_v13 = vpop.f32.mrf.mxu0 }
 0x126   : > { %v437_v15 = vadd.f32 %v760_v13, %v732_v11 }
 0x127   : > { %v398_v17 = vpop.f32.mrf.mxu0 }
 0x128   : > { %441 = vst [vmem:[%s1233_s10 + $0x10] sm:$0xff] %v437_v15  ;;  %v435_v21 = vadd.f32 %v732_v11, %v398_v17  ;;  %v472_v32 = vsel %vm456_vm3, %v437_v15, 0.0 }
 0x129   : > { %v761_v23 = vpop.f32.mrf.mxu0 }
 0x12a   : > { %439 = vst [vmem:[%s1233_s10] sm:$0xff] %v435_v21  ;;  %v438_v24 = vadd.f32 %v761_v23, %v732_v11  ;;  %v470_v29 = vsel %vm454_vm1, %v435_v21, 0.0 }
 0x12b   : > { %v401_v26 = vpop.f32.mrf.mxu0 }
 0x12c   : > { %442 = vst [vmem:[%s1233_s10 + $0x18] sm:$0xff] %v438_v24  ;;  %v436_v27 = vadd.f32 %v732_v11, %v401_v26  ;;  %v473_v34 = vsel %vm457_vm4, %v438_v24, 0.0 }
 0x12e   : > { %440 = vst [vmem:[%s1233_s10 + $0x8] sm:$0xff] %v436_v27  ;;  %v471_v30 = vsel %vm455_vm2, %v436_v27, 0.0 }
 0x12f   : > { %v474_v31 = vadd.f32 %v471_v30, %v470_v29 }
 0x131   : > { %v475_v33 = vadd.f32 %v474_v31, %v472_v32 }
 0x133   : > { %v476_v35 = vadd.f32 %v475_v33, %v473_v34 }
 0x135   : > { %v477_v36 = vrot.slane %v476_v35, 4 }
 0x137   : > { %v478_v37 = vadd.f32 %v477_v36, %v476_v35 }
 0x139   : > { %v479_v38 = vrot.slane %v478_v37, 2 }
 0x13b   : > { %v480_v39 = vadd.f32 %v479_v38, %v478_v37 }
 0x13d   : > { %v481_v40 = vrot.slane %v480_v39, 1 }
 0x13f   : > { %v482_v42 = vadd.f32 %v481_v40, %v480_v39 }
 0x141   : > { %v485_v43 = vmul.f32 %v848_v41, %v482_v42  ;;  %494 = vst [vmem:[%s296_s16] sm:$0x1] %v482_v42 }
 0x143   : > { %v486_v44 = vsub.f32 %v435_v21, %v485_v43  ;;  %v487_v45 = vsub.f32 %v436_v27, %v485_v43  ;;  %v488_v46 = vsub.f32 %v437_v15, %v485_v43  ;;  %v489_v47 = vsub.f32 %v438_v24, %v485_v43 }
 0x145   : > { %v490_v48 = vsel %vm454_vm1, %v486_v44, 0.0  ;;  %v491_v49 = vsel %vm455_vm2, %v487_v45, 0.0  ;;  %v492_v50 = vsel %vm456_vm3, %v488_v46, 0.0  ;;  %v493_v53 = vsel %vm457_vm4, %v489_v47, 0.0 }
 0x146   : > { %v495_v51 = vmul.f32 %v490_v48, %v490_v48  ;;  %v496_v52 = vmul.f32 %v491_v49, %v491_v49  ;;  %v497_v54 = vmul.f32 %v492_v50, %v492_v50  ;;  %v498_v56 = vmul.f32 %v493_v53, %v493_v53 }
 0x148   : > { %v499_v55 = vadd.f32 %v496_v52, %v495_v51 }
 0x14a   : > { %v500_v57 = vadd.f32 %v499_v55, %v497_v54 }
 0x14c   : > { %v501_v58 = vadd.f32 %v500_v57, %v498_v56 }
 0x14e   : > { %v502_v59 = vrot.slane %v501_v58, 4 }
 0x150   : > { %v503_v60 = vadd.f32 %v502_v59, %v501_v58 }
 0x152   : > { %v504_v61 = vrot.slane %v503_v60, 2 }
 0x154   : > { %v505_v62 = vadd.f32 %v504_v61, %v503_v60 }
 0x156   : > { %v506_v63 = vrot.slane %v505_v62, 1  ;;  %524 = sbr.rel (!%p1383_p0) target bundleno = 374 (0x176), region = 52 }
 0x158   : > { %v507_v0 = vadd.f32 %v506_v63, %v505_v62 }
 0x15a   : > { %508 = vst [vmem:[%s1376_s25] sm:$0x1] %v507_v0 }
 0x15b   : > { %s1400_s28 = smov (!%p527_p4, %s526_s28), 4 }
 0x15c   : > { %s1261_s9 = sshll.u32 %s1400_s28, 7 }
 0x15d   : > { %s531_s12 = ssub.s32 512, %s1261_s9 }
 0x15e   : > { %532 = vsyncadd %s510_s17, %s531_s12  ;;  %p737_p2 = scmp.ne.s32.totalorder %s1261_s9, 0  ;;  %s746_s24 = sshll.u32 %s1033_s21, 9 }
 0x15f   : > { %s1271_s27 = scalar_lea.hbm %s1370_s3, %s746_s24  ;;  %s537_s15 = sshll.u32 %s1233_s10, 4  ;;  %s1274_s15 = int_to_ptr.vmem [resolvable:$true] %s537_s15 }
 0x160   : > { %s901_s14 = scalar_lea.vmem %s1274_s15, %s1261_s9  ;;  %s1049_s28 = smov [#allocation8]  }
 0x161   : > { %p902_p6 = scmp.ne.s32.totalorder %s1274_s15, %s901_s14  ;;  %s905_s12 = sshll.u32 %s1049_s28, 4  ;;  %s906_s12 = int_to_ptr.vmem [resolvable:$false] %s905_s12 }
 0x162   : > { %s907_s25 = scalar_lea.vmem %s906_s12, 1024  ;;  %p908_p10 = scmp.lt.s32.totalorder %s1274_s15, %s906_s12 }
 0x163   : > { %p903_p3 = pnand %p902_p6, %p737_p2  ;;  %p909_p12 = scmp.lt.s32.totalorder %s907_s25, %s901_s14 }
 0x165   : > { %p904_p7 = pneg %p903_p3  ;;  %p910_p8 = por %p909_p12, %p908_p10 }
 0x167   : > { %p911_p9 = pnand %p910_p8, %p904_p7 }
 0x169   : > { %914 = shalt.err (!%p911_p9)
}
 0x16a   : > { %s915_s10 = scalar_lea.hbm %s1271_s27, %s1261_s9  ;;  %s919_s13 = scalar_lea.hbm %s1370_s3, 640 }
 0x16b   : > { %p916_p11 = scmp.ne.s32.totalorder %s1271_s27, %s915_s10  ;;  %p920_p0 = scmp.lt.s32.totalorder %s1271_s27, %s1370_s3 }
 0x16c   : > { %p921_p4 = scmp.lt.s32.totalorder %s919_s13, %s915_s10 }
 0x16d   : > { %p917_p1 = pnand %p916_p11, %p737_p2 }
 0x16e   : > { %p922_p6 = por %p921_p4, %p920_p0 }
 0x16f   : > { %p918_p5 = pneg %p917_p1 }
 0x171   : > { %p923_p3 = pnand %p922_p6, %p918_p5 }
 0x173   : > { %926 = shalt.err (!%p923_p3)
}
 0x174   : > { %s1050_s25 = smov 128   ;;  %s1051_s14 = smov 8  }
 0x175   : > { %543 = dma.vmem_to_hbm [thread:$0]  (%p737_p2), %s1274_s15, %s1261_s9, %s1271_s27, %s510_s17, %s1050_s25, %s1050_s25, %s1051_s14  }
 0x176 PF: > { %s741_s24 = sshll.u32 %s1033_s21, 4  ;;  %s553_s10 = sshll.u32 %s296_s16, 4  ;;  %s554_s10 = int_to_ptr.vmem [resolvable:$true] %s553_s10 }
 0x177   : > { %s551_s28 = scalar_lea.hbm %s1371_s4, %s741_s24  ;;  %s927_s12 = scalar_lea.vmem %s554_s10, 16 }
 0x178   : > { %p928_p7 = scmp.ne.s32.totalorder %s554_s10, %s927_s12  ;;  %p1384_p10 = scmp.ne.s32.totalorder %s1379_s6, 0 }
 0x179   : > { %s1052_s17 = smov [#allocation9]  }
 0x17a   : > { %p929_p12 = pnand %p928_p7, %p1384_p10  ;;  %s931_s9 = sshll.u32 %s1052_s17, 4  ;;  %s932_s9 = int_to_ptr.vmem [resolvable:$false] %s931_s9 }
 0x17b   : > { %s933_s27 = scalar_lea.vmem %s932_s9, 32  ;;  %p934_p2 = scmp.lt.s32.totalorder %s554_s10, %s932_s9 }
 0x17c   : > { %p930_p8 = pneg %p929_p12  ;;  %p935_p9 = scmp.lt.s32.totalorder %s933_s27, %s927_s12 }
 0x17e   : > { %p936_p11 = por %p935_p9, %p934_p2 }
 0x180   : > { %p937_p1 = pnand %p936_p11, %p930_p8 }
 0x182   : > { %940 = shalt.err (!%p937_p1)
}
 0x183   : > { %s941_s16 = scalar_lea.hbm %s551_s28, 16  ;;  %s945_s14 = scalar_lea.hbm %s1371_s4, 32 }
 0x184   : > { %p942_p5 = scmp.ne.s32.totalorder %s551_s28, %s941_s16  ;;  %p946_p6 = scmp.lt.s32.totalorder %s551_s28, %s1371_s4 }
 0x185   : > { %p947_p3 = scmp.lt.s32.totalorder %s945_s14, %s941_s16 }
 0x186   : > { %p943_p0 = pnand %p942_p5, %p1384_p10 }
 0x187   : > { %p948_p7 = por %p947_p3, %p946_p6 }
 0x188   : > { %p944_p4 = pneg %p943_p0 }
 0x18a   : > { %p949_p12 = pnand %p948_p7, %p944_p4 }
 0x18c   : > { %952 = shalt.err (!%p949_p12)
}
 0x18d   : > { %767 = dma.vmem_to_hbm [thread:$0]  (%p1384_p10), %s554_s10, 16, %s551_s28, %s1256_s11  }
 0x18e   : > { %s564_s9 = scalar_lea.hbm %s1372_s5, %s741_s24  ;;  %s1385_s27 = scalar_lea.vmem [#allocation11], %s1212_s29 }
 0x18f   : > { %s566_s15 = sshll.u32 %s1385_s27, 4  ;;  %s1053_s16 = smov [#allocation11]   ;;  %s567_s15 = int_to_ptr.vmem [resolvable:$true] %s566_s15 }
 0x190   : > { %s953_s25 = scalar_lea.vmem %s567_s15, 16  ;;  %s957_s14 = sshll.u32 %s1053_s16, 4  ;;  %s958_s14 = int_to_ptr.vmem [resolvable:$false] %s957_s14 }
 0x191   : > { %p954_p8 = scmp.ne.s32.totalorder %s567_s15, %s953_s25  ;;  %s959_s30 = scalar_lea.vmem %s958_s14, 32 }
 0x192   : > { %p960_p11 = scmp.lt.s32.totalorder %s567_s15, %s958_s14  ;;  %p961_p1 = scmp.lt.s32.totalorder %s959_s30, %s953_s25 }
 0x193   : > { %p955_p2 = pnand %p954_p8, %p1384_p10 }
 0x194   : > { %p962_p5 = por %p961_p1, %p960_p11 }
 0x195   : > { %p956_p9 = pneg %p955_p2 }
 0x197   : > { %p963_p0 = pnand %p962_p5, %p956_p9 }
 0x199   : > { %966 = shalt.err (!%p963_p0)
}
 0x19a   : > { %s967_s21 = scalar_lea.hbm %s564_s9, 16  ;;  %s971_s10 = scalar_lea.hbm %s1372_s5, 32 }
 0x19b   : > { %p968_p4 = scmp.ne.s32.totalorder %s564_s9, %s967_s21  ;;  %p972_p7 = scmp.lt.s32.totalorder %s564_s9, %s1372_s5 }
 0x19c   : > { %p973_p12 = scmp.lt.s32.totalorder %s971_s10, %s967_s21 }
 0x19d   : > { %p969_p6 = pnand %p968_p4, %p1384_p10 }
 0x19e   : > { %p974_p8 = por %p973_p12, %p972_p7 }
 0x19f   : > { %p970_p3 = pneg %p969_p6 }
 0x1a1   : > { %p975_p2 = pnand %p974_p8, %p970_p3 }
 0x1a3   : > { %978 = shalt.err (!%p975_p2)
}
 0x1a4   : > { %768 = dma.vmem_to_hbm [thread:$0]  (%p1384_p10), %s567_s15, 16, %s564_s9, %s1256_s11  }
 0x1a5 PF: > { %s578_s12 = sand.u32 1, %s1021_s18   ;;  %p1386_p9 = scmp.ne.s32.totalorder %s1380_s8, 0 }
 0x1a6   : > { %s579_s17 = scalar_lea.sflag [#allocation5], %s578_s12 }
 0x1a7   : > { %p777_p11 = pnand %p715_p13, %p1386_p9 }
 0x1a9   : > { %p778_p1 = pneg %p777_p11 }
 0x1ab   : > { %1012 = dma.done.wait (%p778_p1), %s579_s17, 512  }
 0x1ac   : > { %1014 = vsyncadd (%p778_p1), %s579_s17, 4294966784  ;;  %s1387_s27 = sadd.s32 4294967294, %s1041_s23  }
 0x1ad   : > { %s587_s25 = sand.u32 1, %s1387_s27  }
 0x1ae   : > { %s588_s16 = scalar_lea.sflag [#allocation10], %s587_s25 }
 0x1af   : > { %1016 = dma.done.wait (%p778_p1), %s588_s16, 32  }
 0x1b0   : > { %1018 = vsyncadd (%p778_p1), %s588_s16, 4294967264  ;;  %s26_s23 = sadd.s32 1, %s1041_s23   ;;  %s1388_s18 = smov %s1025_s19 }
 0x1b1   : > { %p23_p10 = scmp.ge.s32.totalorder %s26_s23, 4   ;;  %s1389_s19 = smov %s1029_s20 }
 0x1b2   : > { %s1390_s20 = smov %s1148_s7  ;;  %s1391_s21 = smov %s1037_s22 }
 0x1b3   : > { %s1392_s22 = smov %s1394_s26  ;;  %25 = sbr.rel (!%p23_p10) target bundleno = 9 (0x9), region = 122 }
 0x1b8   :  { %600 = vsyncpa [#allocation4], 1 }
 0x1b9   :  { %602 = vsyncpa [#allocation4 + $0x1], 1 }
 0x1ba   :  { %603 = vsyncpa [#allocation7], 1 }
 0x1bb   :  { %604 = vsyncpa [#allocation5], 1 }
 0x1bc   :  { %606 = vsyncpa [#allocation5 + $0x1], 1 }
 0x1bd   :  { %607 = vsyncpa [#allocation10], 1 }
 0x1be   :  { %609 = vsyncpa [#allocation10 + $0x1], 1 }

// kernel: tpu_custom_call.1
= control target key start
LH: loop header
LB: loop body
LE: loop exit
PB: predicated region body
PF: predicated region fallthrough
CT: control target
= control target key end

     0   :  { %11 = vsyncpa [#allocation4], 0  ;;  %s1367_s0 = inlined_call_operand.hbm [shape: f32[40,48], index: 0, kind: input, shape index: {}]   ;;  %s1368_s1 = inlined_call_operand.hbm [shape: bf16[48,128], index: 1, kind: input, shape index: {}]   ;;  %s1369_s2 = inlined_call_operand.vmem [shape: f32[1,128], index: 2, kind: input, shape index: {}]   ;;  %s1370_s3 = inlined_call_operand.hbm [shape: f32[40,128], index: 3, kind: output, shape index: {0}]   ;;  %s1371_s4 = inlined_call_operand.hbm [shape: f32[2,1,128], index: 4, kind: output, shape index: {1}]   ;;  %s1372_s5 = inlined_call_operand.hbm [shape: f32[2,1,128], index: 5, kind: output, shape index: {2}]  }
   0x1   :  { %13 = vsyncpa [#allocation4 + $0x1], 0 }
   0x2   :  { %14 = vsyncpa [#allocation7], 0 }
   0x3   :  { %15 = vsyncpa [#allocation5], 0 }
   0x4   :  { %17 = vsyncpa [#allocation5 + $0x1], 0 }
   0x5   :  { %18 = vsyncpa [#allocation10], 0 }
   0x6   :  { %20 = vsyncpa [#allocation10 + $0x1], 0  ;;  %s1084_s18 = smov 0   ;;  %s1086_s19 = smov 0  }
   0x7   :  { %s1088_s20 = smov 0   ;;  %s1090_s21 = smov 0  }
   0x8   :  { %s1092_s22 = smov 0   ;;  %s1094_s23 = smov 0  }
   0x9 LB: > { %s1115_s24 = sadd.s32 4294967295, %s1041_s23   ;;  %s1375_s25 = sadd.s32 4294967294, %s1041_s23   ;;  %s1041_s23 = sphi %s1094_s23, %s26_s23   ;;  %s1037_s22 = sphi %s1092_s22, %s1392_s22   ;;  %s1033_s21 = sphi %s1090_s21, %s1391_s21   ;;  %s1029_s20 = sphi %s1088_s20, %s1390_s20   ;;  %s1025_s19 = sphi %s1086_s19, %s1389_s19   ;;  %s1021_s18 = sphi %s1084_s18, %s1388_s18  }
   0xa   : > { %s38_s26 = sadd.s32 1, %s1037_s22  ;;  %s47_s27 = sadd.s32 1, %s1029_s20 }
   0xb   : > { %p40_p0 = scmp.ge.s32.totalorder %s38_s26, 2  ;;  %p54_p1 = scmp.ne.s32.totalorder %s1029_s20, %s1025_s19 }
   0xc   : > { %p55_p2 = scmp.eq.s32.totalorder %s1041_s23, 0  ;;  %p60_p3 = scmp.ne.s32.totalorder %s1025_s19, %s1021_s18 }
   0xd   : > { %s1394_s26 = smov (%p40_p0, %s38_s26), 0  ;;  %p61_p5 = scmp.eq.s32.totalorder %s1115_s24, 0 }
   0xe   : > { %p1127_p4 = por %p55_p2, %p54_p1  ;;  %s42_s29 = ssub.s32 %s1037_s22, %s1394_s26 }
   0xf   : > { %p131_p6 = scmp.eq.s32.totalorder %s1115_s24, 1  ;;  %p45_p7 = scmp.eq.s32.totalorder %s42_s29, 0 }
  0x10   : > { %p1137_p8 = por %p61_p5, %p60_p3  ;;  %p137_p10 = scmp.eq.s32.totalorder %s1375_s25, 1 }
  0x11   : > { %p1141_p9 = por %p131_p6, %p54_p1  ;;  %p713_p12 = scmp.ge.s32.totalorder %s1041_s23, 1 }
  0x12   : > { %s1378_s30 = scalar_select %p1137_p8, 1, 0 }
  0x13   : > { %s1379_s6 = scalar_select %p1141_p9, 1, 0 }
  0x14   : > { %s1148_s7 = scalar_select %p45_p7, %s1029_s20, %s47_s27  }
  0x15   : > { %p1150_p11 = por %p137_p10, %p60_p3  ;;  %p196_p13 = scmp.lt.s32.totalorder %s1041_s23, 3 }
  0x16   : > { %s1043_s10 = smov [#allocation6]  }
  0x17   : > { %s1380_s8 = scalar_select %p1150_p11, 1, 0 }
  0x18   : > { %p1156_p0 = pnand %p713_p12, %p196_p13  ;;  %s211_s11 = sshll.u32 %s1043_s10, 4  ;;  %s212_s11 = int_to_ptr.vmem [resolvable:$true] %s211_s11 }
  0x19   : > { %s860_s12 = scalar_lea.vmem %s212_s11, 384  ;;  %p868_p11 = scmp.lt.s32.totalorder %s212_s11, %s212_s11 }
  0x1a   : > { %p772_p1 = pneg %p1156_p0  ;;  %p861_p3 = scmp.ne.s32.totalorder %s212_s11, %s860_s12 }
  0x1b   : > { %p869_p9 = scmp.lt.s32.totalorder %s860_s12, %s860_s12 }
  0x1c   : > { %p773_p2 = pnand %p772_p1, %p61_p5 }
  0x1d   : > { %p870_p8 = por %p869_p9, %p868_p11 }
  0x1e   : > { %p851_p6 = pneg %p773_p2 }
  0x20   : > { %p863_p7 = pnand %p861_p3, %p851_p6 }
  0x22   : > { %p864_p10 = pneg %p863_p7 }
  0x24   : > { %p871_p12 = pnand %p870_p8, %p864_p10 }
  0x26   : > { %874 = shalt.err (!%p871_p12)
}
  0x27   : > { %s1044_s13 = smov 64   ;;  %s1045_s14 = smov 4  }
  0x28   : > { %775 = dma.hbm_to_vmem [thread:$0]  (!%p773_p2), %s1368_s1, 384, %s212_s11, [#allocation7], %s1044_s13, %s1044_s13, %s1045_s14  }
  0x29   : > { %p715_p13 = scmp.ge.s32.totalorder %s1041_s23, 2 }
  0x2b   : > { %224 = sbr.rel (%p715_p13) target bundleno = 80 (0x50), region = 24 }
  0x30   : > { %227 = sbr.rel (!%p1127_p4) target bundleno = 80 (0x50), region = 28  ;;  %s228_s17 = sand.u32 (%p1127_p4), 1, %s1029_s20  }
  0x31   : > { %s717_s27 = sshll.u32 (%p1127_p4), %s1037_s22, 2  ;;  %s716_s29 = sshll.u32 (%p1127_p4), %s228_s17, 5 }
  0x32   : > { %s234_s10 = ssub.s32 (%p1127_p4), 5, %s717_s27  ;;  %s1177_s13 = scalar_lea.sflag (%p1127_p4), [#allocation4], %s228_s17 }
  0x33   : > { %p235_p8 = scmp.lt.s32.totalorder (%p1127_p4), %s234_s10, 4  ;;  %s232_s14 = scalar_lea.vmem (%p1127_p4), [#allocation3], %s716_s29 }
  0x35   : > { %s1396_s10 = smov (!%p235_p8, %s234_s10), 4 }
  0x36   : > { %s1174_s12 = sshll.u32 %s1396_s10, 7 }
  0x37   : > { %s239_s11 = ssub.s32 512, %s1174_s12 }
  0x38   : > { %240 = vsyncadd %s1177_s13, %s239_s11  ;;  %p719_p4 = scmp.ne.s32.totalorder %s1174_s12, 0  ;;  %s745_s28 = sshll.u32 %s1037_s22, 9 }
  0x39   : > { %s1185_s27 = scalar_lea.hbm %s1367_s0, %s745_s28  ;;  %s246_s10 = sshll.u32 %s232_s14, 4  ;;  %s1187_s10 = int_to_ptr.vmem [resolvable:$true] %s246_s10 }
  0x3a   : > { %s875_s17 = scalar_lea.hbm %s1185_s27, %s1174_s12  ;;  %s879_s25 = scalar_lea.hbm %s1367_s0, 640 }
  0x3b   : > { %p876_p9 = scmp.ne.s32.totalorder %s1185_s27, %s875_s17  ;;  %p881_p2 = scmp.lt.s32.totalorder %s879_s25, %s875_s17 }
  0x3d   : > { %p877_p11 = pnand %p876_p9, %p719_p4 }
  0x3f   : > { %p878_p1 = pneg %p877_p11 }
  0x41   : > { %p883_p6 = pnand %p881_p2, %p878_p1 }
  0x43   : > { %886 = shalt.err (!%p883_p6)
}
  0x44   : > { %s887_s14 = scalar_lea.vmem %s1187_s10, %s1174_s12  ;;  %s1046_s28 = smov [#allocation3]  }
  0x45   : > { %p888_p3 = scmp.ne.s32.totalorder %s1187_s10, %s887_s14  ;;  %s891_s15 = sshll.u32 %s1046_s28, 4  ;;  %s892_s15 = int_to_ptr.vmem [resolvable:$false] %s891_s15 }
  0x46   : > { %s893_s16 = scalar_lea.vmem %s892_s15, 1024  ;;  %p894_p12 = scmp.lt.s32.totalorder %s1187_s10, %s892_s15 }
  0x47   : > { %p889_p7 = pnand %p888_p3, %p719_p4  ;;  %p895_p8 = scmp.lt.s32.totalorder %s893_s16, %s887_s14 }
  0x49   : > { %p890_p10 = pneg %p889_p7  ;;  %p896_p9 = por %p895_p8, %p894_p12 }
  0x4b   : > { %p897_p11 = pnand %p896_p9, %p890_p10 }
  0x4d   : > { %900 = shalt.err (!%p897_p11)
}
  0x4e   : > { %s1047_s25 = smov 128   ;;  %s1048_s17 = smov 8  }
  0x4f   : > { %252 = dma.hbm_to_vmem [thread:$0]  (%p719_p4), %s1185_s27, %s1174_s12, %s1187_s10, %s1177_s13, %s1047_s25, %s1047_s25, %s1048_s17  }
  0x50 PF: > { %258 = sbr.rel (%p1156_p0) target bundleno = 421 (0x1a5), region = 32  ;;  %s1212_s29 = sand.u32 (!%p1156_p0), 1, %s1025_s19  }
  0x51   : > { %s724_s11 = sshll.u32 (!%p1156_p0), %s1212_s29, 5  ;;  %s261_s14 = scalar_lea.sflag (!%p1156_p0), [#allocation4], %s1212_s29 }
  0x52   : > { %s264_s28 = scalar_lea.vmem (!%p1156_p0), [#allocation3], %s724_s11  ;;  %p1382_p1 = scmp.ne.s32.totalorder (!%p1156_p0), %s1378_s30, 0 }
  0x55   : > { %1004 = dma.done.wait (%p1382_p1), %s261_s14, 512  }
  0x56   : > { %1006 = vsyncadd (%p1382_p1), %s261_s14, 4294966784 }
  0x57   : > { %1008 = dma.done.wait (%p61_p5), [#allocation7], 384  }
  0x58   : > { %1010 = vsyncadd (%p61_p5), [#allocation7], 4294966912  ;;  %v844_v0 = vld [vmem:[#allocation6 + $0x10] sm:$0xff]   ;;  %v845_v1 = vld [vmem:[#allocation6 + $0x8] sm:$0xff]   ;;  %vm357_vm0 = vcmask 392192   ;;  %s514_s30 = sand.u32 1, %s1115_s24   ;;  %v443_v9 = vlaneseq }
  0x59   : > { %752 = vmatprep.subr.bf16.mxu0 %v844_v0  ;;  %v323_v2 = vld [vmem:[%s264_s28] sm:$0xff]  ;;  %v324_v3 = vld [vmem:[%s264_s28 + $0x8] sm:$0xff]  ;;  %v325_v6 = vld [vmem:[%s264_s28 + $0x10] sm:$0xff]  ;;  %s733_s9 = sshll.u32 %s1033_s21, 5  ;;  %s1233_s10 = scalar_lea.vmem [#allocation8], %s724_s11 }
  0x5a   : > { %753 = vmatpush3.bf16.msra.mxu0 %v844_v0  ;;  %v846_v4 = vld [vmem:[#allocation6] sm:$0xff]   ;;  %v331_v5 = vpack.c.bf16 %v324_v3, %v323_v2  ;;  %v326_v7 = vld [vmem:[%s264_s28 + $0x18] sm:$0xff]  ;;  %s458_s12 = ssub.s32 40, %s733_s9  ;;  %v444_v10 = vshrl.u32 %v443_v9, 7  ;;  %v449_v16 = vstv %s733_s9  ;;  %s296_s16 = scalar_lea.vmem [#allocation9], %s1212_s29 }
  0x5b   : > { %754 = vmatprep.subr.bf16.mxu0 %v845_v1  ;;  %v332_v8 = vpack.c.bf16 %v326_v7, %v325_v6  ;;  %p459_p5 = scmp.lt.s32.totalorder %s458_s12, 32  ;;  %v732_v11 = vld [vmem:[%s1369_s2] ss:$0 sm:$0xff]  ;;  %s1376_s25 = scalar_lea.vmem [#allocation11], %s1212_s29 }
  0x5c   : > { %758 = vmatprep.mubr.msk.bf16.mxu0 %vm357_vm0, %v331_v5  ;;  %v445_v12 = vadd.s32 8, %v444_v10  ;;  %v446_v14 = vadd.s32 16, %v444_v10  ;;  %v450_v18 = vadd.s32 %v449_v16, %v444_v10  ;;  %v447_v19 = vadd.s32 24, %v444_v10  ;;  %s510_s17 = scalar_lea.sflag [#allocation5], %s1212_s29  ;;  %s1256_s11 = scalar_lea.sflag [#allocation10], %s514_s30 }
  0x5d   : > { %s1398_s12 = smov (!%p459_p5, %s458_s12), 32  ;;  %p1383_p0 = scmp.ne.s32.totalorder %s1379_s6, 0 }
  0x5e   : > { %755 = vmatpush3.bf16.msra.mxu0 %v845_v1  ;;  %v451_v20 = vadd.s32 %v449_v16, %v445_v12  ;;  %v452_v22 = vadd.s32 %v449_v16, %v446_v14  ;;  %s461_s15 = scvt.s32.f32 %s1398_s12  ;;  %vm454_vm1 = vcmp.lt.s32.totalorder %v450_v18, 40  ;;  %v453_v25 = vadd.s32 %v449_v16, %v447_v19  ;;  %s735_s14 = sshll.u32 (%p1383_p0), %s1033_s21, 2 }
  0x5f   : > { %756 = vmatprep.subr.bf16.mxu0 %v846_v4  ;;  %s526_s28 = ssub.s32 (%p1383_p0), 5, %s735_s14 }
  0x60   : > { %vm455_vm2 = vcmp.lt.s32.totalorder %v451_v20, 40  ;;  %vm456_vm3 = vcmp.lt.s32.totalorder %v452_v22, 40  ;;  %v483_v28 = vstv %s461_s15  ;;  %vm457_vm4 = vcmp.lt.s32.totalorder %v453_v25, 40  ;;  %p527_p4 = scmp.lt.s32.totalorder (%p1383_p0), %s526_s28, 4 }
  0x61   : > { %847 = vrcp.f32 %v483_v28 }
  0x62   : > { %757 = vmatpush3.bf16.msra.mxu0 %v846_v4 }
  0x65   : > { %759 = vmatmul.mubr.msk.bf16.vlgmr.msra.gmra.mxu0 %vm357_vm0, %v332_v8 }
  0x6e   : > { %v848_v41 = vpop.eup %847 }
 0x125   : > { %v760_v13 = vpop.f32.mrf.mxu0 }
 0x126   : > { %v437_v15 = vadd.f32 %v760_v13, %v732_v11 }
 0x127   : > { %v398_v17 = vpop.f32.mrf.mxu0 }
 0x128   : > { %441 = vst [vmem:[%s1233_s10 + $0x10] sm:$0xff] %v437_v15  ;;  %v435_v21 = vadd.f32 %v732_v11, %v398_v17  ;;  %v472_v32 = vsel %vm456_vm3, %v437_v15, 0.0 }
 0x129   : > { %v761_v23 = vpop.f32.mrf.mxu0 }
 0x12a   : > { %439 = vst [vmem:[%s1233_s10] sm:$0xff] %v435_v21  ;;  %v438_v24 = vadd.f32 %v761_v23, %v732_v11  ;;  %v470_v29 = vsel %vm454_vm1, %v435_v21, 0.0 }
 0x12b   : > { %v401_v26 = vpop.f32.mrf.mxu0 }
 0x12c   : > { %442 = vst [vmem:[%s1233_s10 + $0x18] sm:$0xff] %v438_v24  ;;  %v436_v27 = vadd.f32 %v732_v11, %v401_v26  ;;  %v473_v34 = vsel %vm457_vm4, %v438_v24, 0.0 }
 0x12e   : > { %440 = vst [vmem:[%s1233_s10 + $0x8] sm:$0xff] %v436_v27  ;;  %v471_v30 = vsel %vm455_vm2, %v436_v27, 0.0 }
 0x12f   : > { %v474_v31 = vadd.f32 %v471_v30, %v470_v29 }
 0x131   : > { %v475_v33 = vadd.f32 %v474_v31, %v472_v32 }
 0x133   : > { %v476_v35 = vadd.f32 %v475_v33, %v473_v34 }
 0x135   : > { %v477_v36 = vrot.slane %v476_v35, 4 }
 0x137   : > { %v478_v37 = vadd.f32 %v477_v36, %v476_v35 }
 0x139   : > { %v479_v38 = vrot.slane %v478_v37, 2 }
 0x13b   : > { %v480_v39 = vadd.f32 %v479_v38, %v478_v37 }
 0x13d   : > { %v481_v40 = vrot.slane %v480_v39, 1 }
 0x13f   : > { %v482_v42 = vadd.f32 %v481_v40, %v480_v39 }
 0x141   : > { %v485_v43 = vmul.f32 %v848_v41, %v482_v42  ;;  %494 = vst [vmem:[%s296_s16] sm:$0x1] %v482_v42 }
 0x143   : > { %v486_v44 = vsub.f32 %v435_v21, %v485_v43  ;;  %v487_v45 = vsub.f32 %v436_v27, %v485_v43  ;;  %v488_v46 = vsub.f32 %v437_v15, %v485_v43  ;;  %v489_v47 = vsub.f32 %v438_v24, %v485_v43 }
 0x145   : > { %v490_v48 = vsel %vm454_vm1, %v486_v44, 0.0  ;;  %v491_v49 = vsel %vm455_vm2, %v487_v45, 0.0  ;;  %v492_v50 = vsel %vm456_vm3, %v488_v46, 0.0  ;;  %v493_v53 = vsel %vm457_vm4, %v489_v47, 0.0 }
 0x146   : > { %v495_v51 = vmul.f32 %v490_v48, %v490_v48  ;;  %v496_v52 = vmul.f32 %v491_v49, %v491_v49  ;;  %v497_v54 = vmul.f32 %v492_v50, %v492_v50  ;;  %v498_v56 = vmul.f32 %v493_v53, %v493_v53 }
 0x148   : > { %v499_v55 = vadd.f32 %v496_v52, %v495_v51 }
 0x14a   : > { %v500_v57 = vadd.f32 %v499_v55, %v497_v54 }
 0x14c   : > { %v501_v58 = vadd.f32 %v500_v57, %v498_v56 }
 0x14e   : > { %v502_v59 = vrot.slane %v501_v58, 4 }
 0x150   : > { %v503_v60 = vadd.f32 %v502_v59, %v501_v58 }
 0x152   : > { %v504_v61 = vrot.slane %v503_v60, 2 }
 0x154   : > { %v505_v62 = vadd.f32 %v504_v61, %v503_v60 }
 0x156   : > { %v506_v63 = vrot.slane %v505_v62, 1  ;;  %524 = sbr.rel (!%p1383_p0) target bundleno = 374 (0x176), region = 52 }
 0x158   : > { %v507_v0 = vadd.f32 %v506_v63, %v505_v62 }
 0x15a   : > { %508 = vst [vmem:[%s1376_s25] sm:$0x1] %v507_v0 }
 0x15b   : > { %s1400_s28 = smov (!%p527_p4, %s526_s28), 4 }
 0x15c   : > { %s1261_s9 = sshll.u32 %s1400_s28, 7 }
 0x15d   : > { %s531_s12 = ssub.s32 512, %s1261_s9 }
 0x15e   : > { %532 = vsyncadd %s510_s17, %s531_s12  ;;  %p737_p2 = scmp.ne.s32.totalorder %s1261_s9, 0  ;;  %s746_s24 = sshll.u32 %s1033_s21, 9 }
 0x15f   : > { %s1271_s27 = scalar_lea.hbm %s1370_s3, %s746_s24  ;;  %s537_s15 = sshll.u32 %s1233_s10, 4  ;;  %s1274_s15 = int_to_ptr.vmem [resolvable:$true] %s537_s15 }
 0x160   : > { %s901_s14 = scalar_lea.vmem %s1274_s15, %s1261_s9  ;;  %s1049_s28 = smov [#allocation8]  }
 0x161   : > { %p902_p6 = scmp.ne.s32.totalorder %s1274_s15, %s901_s14  ;;  %s905_s12 = sshll.u32 %s1049_s28, 4  ;;  %s906_s12 = int_to_ptr.vmem [resolvable:$false] %s905_s12 }
 0x162   : > { %s907_s25 = scalar_lea.vmem %s906_s12, 1024  ;;  %p908_p10 = scmp.lt.s32.totalorder %s1274_s15, %s906_s12 }
 0x163   : > { %p903_p3 = pnand %p902_p6, %p737_p2  ;;  %p909_p12 = scmp.lt.s32.totalorder %s907_s25, %s901_s14 }
 0x165   : > { %p904_p7 = pneg %p903_p3  ;;  %p910_p8 = por %p909_p12, %p908_p10 }
 0x167   : > { %p911_p9 = pnand %p910_p8, %p904_p7 }
 0x169   : > { %914 = shalt.err (!%p911_p9)
}
 0x16a   : > { %s915_s10 = scalar_lea.hbm %s1271_s27, %s1261_s9  ;;  %s919_s13 = scalar_lea.hbm %s1370_s3, 640 }
 0x16b   : > { %p916_p11 = scmp.ne.s32.totalorder %s1271_s27, %s915_s10  ;;  %p920_p0 = scmp.lt.s32.totalorder %s1271_s27, %s1370_s3 }
 0x16c   : > { %p921_p4 = scmp.lt.s32.totalorder %s919_s13, %s915_s10 }
 0x16d   : > { %p917_p1 = pnand %p916_p11, %p737_p2 }
 0x16e   : > { %p922_p6 = por %p921_p4, %p920_p0 }
 0x16f   : > { %p918_p5 = pneg %p917_p1 }
 0x171   : > { %p923_p3 = pnand %p922_p6, %p918_p5 }
 0x173   : > { %926 = shalt.err (!%p923_p3)
}
 0x174   : > { %s1050_s25 = smov 128   ;;  %s1051_s14 = smov 8  }
 0x175   : > { %543 = dma.vmem_to_hbm [thread:$0]  (%p737_p2), %s1274_s15, %s1261_s9, %s1271_s27, %s510_s17, %s1050_s25, %s1050_s25, %s1051_s14  }
 0x176 PF: > { %s741_s24 = sshll.u32 %s1033_s21, 4  ;;  %s553_s10 = sshll.u32 %s296_s16, 4  ;;  %s554_s10 = int_to_ptr.vmem [resolvable:$true] %s553_s10 }
 0x177   : > { %s551_s28 = scalar_lea.hbm %s1371_s4, %s741_s24  ;;  %s927_s12 = scalar_lea.vmem %s554_s10, 16 }
 0x178   : > { %p928_p7 = scmp.ne.s32.totalorder %s554_s10, %s927_s12  ;;  %p1384_p10 = scmp.ne.s32.totalorder %s1379_s6, 0 }
 0x179   : > { %s1052_s17 = smov [#allocation9]  }
 0x17a   : > { %p929_p12 = pnand %p928_p7, %p1384_p10  ;;  %s931_s9 = sshll.u32 %s1052_s17, 4  ;;  %s932_s9 = int_to_ptr.vmem [resolvable:$false] %s931_s9 }
 0x17b   : > { %s933_s27 = scalar_lea.vmem %s932_s9, 32  ;;  %p934_p2 = scmp.lt.s32.totalorder %s554_s10, %s932_s9 }
 0x17c   : > { %p930_p8 = pneg %p929_p12  ;;  %p935_p9 = scmp.lt.s32.totalorder %s933_s27, %s927_s12 }
 0x17e   : > { %p936_p11 = por %p935_p9, %p934_p2 }
 0x180   : > { %p937_p1 = pnand %p936_p11, %p930_p8 }
 0x182   : > { %940 = shalt.err (!%p937_p1)
}
 0x183   : > { %s941_s16 = scalar_lea.hbm %s551_s28, 16  ;;  %s945_s14 = scalar_lea.hbm %s1371_s4, 32 }
 0x184   : > { %p942_p5 = scmp.ne.s32.totalorder %s551_s28, %s941_s16  ;;  %p946_p6 = scmp.lt.s32.totalorder %s551_s28, %s1371_s4 }
 0x185   : > { %p947_p3 = scmp.lt.s32.totalorder %s945_s14, %s941_s16 }
 0x186   : > { %p943_p0 = pnand %p942_p5, %p1384_p10 }
 0x187   : > { %p948_p7 = por %p947_p3, %p946_p6 }
 0x188   : > { %p944_p4 = pneg %p943_p0 }
 0x18a   : > { %p949_p12 = pnand %p948_p7, %p944_p4 }
 0x18c   : > { %952 = shalt.err (!%p949_p12)
}
 0x18d   : > { %767 = dma.vmem_to_hbm [thread:$0]  (%p1384_p10), %s554_s10, 16, %s551_s28, %s1256_s11  }
 0x18e   : > { %s564_s9 = scalar_lea.hbm %s1372_s5, %s741_s24  ;;  %s1385_s27 = scalar_lea.vmem [#allocation11], %s1212_s29 }
 0x18f   : > { %s566_s15 = sshll.u32 %s1385_s27, 4  ;;  %s1053_s16 = smov [#allocation11]   ;;  %s567_s15 = int_to_ptr.vmem [resolvable:$true] %s566_s15 }
 0x190   : > { %s953_s25 = scalar_lea.vmem %s567_s15, 16  ;;  %s957_s14 = sshll.u32 %s1053_s16, 4  ;;  %s958_s14 = int_to_ptr.vmem [resolvable:$false] %s957_s14 }
 0x191   : > { %p954_p8 = scmp.ne.s32.totalorder %s567_s15, %s953_s25  ;;  %s959_s30 = scalar_lea.vmem %s958_s14, 32 }
 0x192   : > { %p960_p11 = scmp.lt.s32.totalorder %s567_s15, %s958_s14  ;;  %p961_p1 = scmp.lt.s32.totalorder %s959_s30, %s953_s25 }
 0x193   : > { %p955_p2 = pnand %p954_p8, %p1384_p10 }
 0x194   : > { %p962_p5 = por %p961_p1, %p960_p11 }
 0x195   : > { %p956_p9 = pneg %p955_p2 }
 0x197   : > { %p963_p0 = pnand %p962_p5, %p956_p9 }
 0x199   : > { %966 = shalt.err (!%p963_p0)
}
 0x19a   : > { %s967_s21 = scalar_lea.hbm %s564_s9, 16  ;;  %s971_s10 = scalar_lea.hbm %s1372_s5, 32 }
 0x19b   : > { %p968_p4 = scmp.ne.s32.totalorder %s564_s9, %s967_s21  ;;  %p972_p7 = scmp.lt.s32.totalorder %s564_s9, %s1372_s5 }
 0x19c   : > { %p973_p12 = scmp.lt.s32.totalorder %s971_s10, %s967_s21 }
 0x19d   : > { %p969_p6 = pnand %p968_p4, %p1384_p10 }
 0x19e   : > { %p974_p8 = por %p973_p12, %p972_p7 }
 0x19f   : > { %p970_p3 = pneg %p969_p6 }
 0x1a1   : > { %p975_p2 = pnand %p974_p8, %p970_p3 }
 0x1a3   : > { %978 = shalt.err (!%p975_p2)
}
 0x1a4   : > { %768 = dma.vmem_to_hbm [thread:$0]  (%p1384_p10), %s567_s15, 16, %s564_s9, %s1256_s11  }
 0x1a5 PF: > { %s578_s12 = sand.u32 1, %s1021_s18   ;;  %p1386_p9 = scmp.ne.s32.totalorder %s1380_s8, 0 }
 0x1a6   : > { %s579_s17 = scalar_lea.sflag [#allocation5], %s578_s12 }
 0x1a7   : > { %p777_p11 = pnand %p715_p13, %p1386_p9 }
 0x1a9   : > { %p778_p1 = pneg %p777_p11 }
 0x1ab   : > { %1012 = dma.done.wait (%p778_p1), %s579_s17, 512  }
 0x1ac   : > { %1014 = vsyncadd (%p778_p1), %s579_s17, 4294966784  ;;  %s1387_s27 = sadd.s32 4294967294, %s1041_s23  }
 0x1ad   : > { %s587_s25 = sand.u32 1, %s1387_s27  }
 0x1ae   : > { %s588_s16 = scalar_lea.sflag [#allocation10], %s587_s25 }
 0x1af   : > { %1016 = dma.done.wait (%p778_p1), %s588_s16, 32  }
 0x1b0   : > { %1018 = vsyncadd (%p778_p1), %s588_s16, 4294967264  ;;  %s26_s23 = sadd.s32 1, %s1041_s23   ;;  %s1388_s18 = smov %s1025_s19 }
 0x1b1   : > { %p23_p10 = scmp.ge.s32.totalorder %s26_s23, 4   ;;  %s1389_s19 = smov %s1029_s20 }
 0x1b2   : > { %s1390_s20 = smov %s1148_s7  ;;  %s1391_s21 = smov %s1037_s22 }
 0x1b3   : > { %s1392_s22 = smov %s1394_s26  ;;  %25 = sbr.rel (!%p23_p10) target bundleno = 9 (0x9), region = 122 }
 0x1b8   :  { %600 = vsyncpa [#allocation4], 1 }
 0x1b9   :  { %602 = vsyncpa [#allocation4 + $0x1], 1 }
 0x1ba   :  { %603 = vsyncpa [#allocation7], 1 }
 0x1bb   :  { %604 = vsyncpa [#allocation5], 1 }
 0x1bc   :  { %606 = vsyncpa [#allocation5 + $0x1], 1 }
 0x1bd   :  { %607 = vsyncpa [#allocation10], 1 }
 0x1be   :  { %609 = vsyncpa [#allocation10 + $0x1], 1 }

</bundles_post_ra>
